<compile_context>
chip_gen: v7x
topology: tpu7x:2x2x1
jax: 0.10.0
libtpu: 0.0.40
codegen_flags: <defaults>
</compile_context>

<pallas_src>
import jax
import jax.numpy as jnp
from jax.experimental import pallas as pl
from jax.experimental.pallas import tpu as pltpu

_PAD = 128  # lane-dense feature padding


def _round_up(x, m):
    return ((x + m - 1) // m) * m


def _mlp_kernel(x_ref, w_ref, b_ref, o_ref):
    """Fused n-layer MLP on one batch tile.

    x_ref: [tile_b, 128] bf16   w_ref: [L, 128, 128] bf16   b_ref: [L, 1, 128] f32
    o_ref: [tile_b, 128] f32
    """
    n_layers = w_ref.shape[0]
    h = x_ref[...]  # bf16
    for l in range(n_layers):
        acc = jnp.dot(h, w_ref[l], preferred_element_type=jnp.float32)
        acc = acc + b_ref[l]                      # [1,128] f32 broadcast
        if l < n_layers - 1:
            h = jnp.maximum(acc, 0.0).astype(jnp.bfloat16)   # ReLU in f32, bf16 for next dot
        else:
            o_ref[...] = acc.astype(o_ref.dtype)             # final layer: no ReLU


def pack_params(params, pad=_PAD):
    """Pack list of (W [in,out] f32, b [1,out] f32) into padded bf16/f32 slabs."""
    n = len(params)
    w_slab = jnp.zeros((n, pad, pad), jnp.bfloat16)
    b_slab = jnp.zeros((n, 1, pad), jnp.float32)
    for l, (w, b) in enumerate(params):
        fi, fo = w.shape
        w_slab = w_slab.at[l, :fi, :fo].set(w.astype(jnp.bfloat16))
        b_slab = b_slab.at[l, 0, :fo].set(b.reshape(-1).astype(jnp.float32))
    return w_slab, b_slab


def diffusion_model_forward(x, params, *, tile_b=None):
    """x: [B, input_dim] float32.  params: list of (W [in,out], b [1,out])."""
    B, in_dim = x.shape
    out_dim = params[-1][0].shape[1]
    n_layers = len(params)

    w_slab, b_slab = pack_params(params)

    # --- batch tile selection: multiple of 8, <=256 rows, >=2 grid steps when possible ---
    if tile_b is None:
        b8 = _round_up(B, 8)
        tile_b = 8 if b8 <= 8 else min(256, _round_up((b8 + 1) // 2, 8))
    tile_b = max(8, _round_up(tile_b, 8))

    Bp = _round_up(B, tile_b)          # pad batch so no tail rows are dropped
    grid = (pl.cdiv(Bp, tile_b),)

    # Lane-dense, zero-padded input (padded lanes stay exactly zero through the MLP).
    x_p = jnp.zeros((Bp, _PAD), jnp.bfloat16).at[:B, :in_dim].set(x.astype(jnp.bfloat16))

    in_specs = [
        pl.BlockSpec((tile_b, _PAD), lambda i: (i, 0)),                 # activations
        pl.BlockSpec((n_layers, _PAD, _PAD), lambda i: (0, 0, 0)),      # resident weight slab
        pl.BlockSpec((n_layers, 1, _PAD), lambda i: (0, 0, 0)),         # resident bias slab
    ]
    out_specs = pl.BlockSpec((tile_b, _PAD), lambda i: (i, 0))

    flops = 2 * Bp * n_layers * _PAD * _PAD
    bytes_accessed = (x_p.size * x_p.dtype.itemsize
                      + w_slab.size * w_slab.dtype.itemsize
                      + b_slab.size * b_slab.dtype.itemsize
                      + Bp * _PAD * 4)

    out_padded = pl.pallas_call(
        _mlp_kernel,
        out_shape=jax.ShapeDtypeStruct((Bp, _PAD), jnp.float32),
        grid_spec=pltpu.PrefetchScalarGridSpec(
            num_scalar_prefetch=0,
            grid=grid,
            in_specs=in_specs,
            out_specs=out_specs,
        ),
        compiler_params=pltpu.CompilerParams(
            dimension_semantics=("parallel",),
            vmem_limit_bytes=32 * 1024 * 1024,
        ),
        cost_estimate=pl.CostEstimate(
            flops=flops, transcendentals=0, bytes_accessed=bytes_accessed),
    )(x_p, w_slab, b_slab)

    return out_padded[:B, :out_dim].astype(x.dtype)


def init_params(key, input_dim, hidden_dim, output_dim):
    """Deterministic init mirroring the PyTorch layer shapes (W stored as [in,out])."""
    dims = [(input_dim, 128),
            (128, hidden_dim),
            (hidden_dim, hidden_dim),
            (hidden_dim, hidden_dim),
            (hidden_dim, hidden_dim),
            (hidden_dim, hidden_dim),
            (hidden_dim, output_dim)]
    params = []
    for (fan_in, fan_out) in dims:
        key, kw, kb = jax.random.split(key, 3)
        bound = 1.0 / jnp.sqrt(fan_in)
        w = jax.random.uniform(kw, (fan_in, fan_out), jnp.float32, -bound, bound)
        b = jax.random.uniform(kb, (1, fan_out), jnp.float32, -bound, bound)
        params.append((w, b))
    return params


def reference_forward_bf16(x, params):
    """JAX reference mimicking the kernel's bf16 operands / f32 accumulation."""
    h = x.astype(jnp.bfloat16).astype(jnp.float32)
    for i, (w, b) in enumerate(params):
        wq = w.astype(jnp.bfloat16).astype(jnp.float32)
        h = h @ wq + b.reshape(1, -1)
        if i < len(params) - 1:
            h = jnp.maximum(h, 0.0).astype(jnp.bfloat16).astype(jnp.float32)
    return h


if __name__ == "__main__":
    input_dim, hidden_dim, output_dim = 16, 32, 8
    batch = 8

    key = jax.random.PRNGKey(0)
    key, kx = jax.random.split(key)
    x = jax.random.normal(kx, (batch, input_dim), jnp.float32)
    params = init_params(key, input_dim, hidden_dim, output_dim)

    out = diffusion_model_forward(x, params)
    out = jax.block_until_ready(out)

    ref = reference_forward_bf16(x, params)
    assert out.shape == (batch, output_dim)
    assert jnp.allclose(out, ref, atol=1e-2, rtol=1e-2), "mismatch vs JAX reference"

    print("KERNEL_OK")
</pallas_src>

<mosaic_0001>
module attributes {stable_mosaic.version = 11 : i64} {
  func.func @_mlp_kernel(%arg0: i32, %arg1: memref<8x128xbf16, #tpu.memory_space<vmem>>, %arg2: memref<7x128x128xbf16, #tpu.memory_space<vmem>>, %arg3: memref<7x1x128xf32, #tpu.memory_space<vmem>>, %arg4: memref<8x128xf32, #tpu.memory_space<vmem>>) attributes {dimension_semantics = [#tpu.dimension_semantics<parallel>], iteration_bounds = array<i64: 1>, scalar_prefetch = 0 : i64, scratch_operands = 0 : i64, tpu.core_type = #tpu.core_type<tc>, window_params = [{transform_indices = @transform_0, window_bounds = array<i64: 8, 128>}, {pipeline_mode = #tpu.pipeline_mode<synchronous>, transform_indices = @transform_1, window_bounds = array<i64: 7, 128, 128>}, {pipeline_mode = #tpu.pipeline_mode<synchronous>, transform_indices = @transform_2, window_bounds = array<i64: 7, 1, 128>}, {transform_indices = @transform_3, window_bounds = array<i64: 8, 128>}]} {
    %c0 = arith.constant 0 : index
    %c0_0 = arith.constant 0 : index
    %0 = vector.load %arg1[%c0, %c0_0] : memref<8x128xbf16, #tpu.memory_space<vmem>>, vector<8x128xbf16>
    %c0_1 = arith.constant 0 : index
    %c0_2 = arith.constant 0 : index
    %c0_3 = arith.constant 0 : index
    %1 = vector.load %arg2[%c0_1, %c0_2, %c0_3] : memref<7x128x128xbf16, #tpu.memory_space<vmem>>, vector<1x128x128xbf16>
    %2 = vector.shape_cast %1 : vector<1x128x128xbf16> to vector<128x128xbf16>
    %cst = arith.constant dense<0.000000e+00> : vector<8x128xf32>
    %3 = tpu.matmul %0, %2, %cst {dimension_numbers = #tpu.dot_dimension_numbers<[1], [0], [0], [1], [0, 0, 1, 1], [], []>} : vector<8x128xbf16>, vector<128x128xbf16>, vector<8x128xf32> -> vector<8x128xf32>
    %c0_4 = arith.constant 0 : index
    %c0_5 = arith.constant 0 : index
    %c0_6 = arith.constant 0 : index
    %4 = vector.load %arg3[%c0_4, %c0_5, %c0_6] : memref<7x1x128xf32, #tpu.memory_space<vmem>>, vector<1x1x128xf32>
    %5 = vector.shape_cast %4 : vector<1x1x128xf32> to vector<1x128xf32>
    %6 = vector.broadcast %5 : vector<1x128xf32> to vector<8x128xf32>
    %7 = arith.addf %3, %6 : vector<8x128xf32>
    %cst_7 = arith.constant 0.000000e+00 : f32
    %8 = vector.broadcast %cst_7 : f32 to vector<8x128xf32>
    %9 = arith.maximumf %7, %8 : vector<8x128xf32>
    %10 = arith.truncf %9 : vector<8x128xf32> to vector<8x128xbf16>
    %c1 = arith.constant 1 : index
    %c0_8 = arith.constant 0 : index
    %c0_9 = arith.constant 0 : index
    %11 = vector.load %arg2[%c1, %c0_8, %c0_9] : memref<7x128x128xbf16, #tpu.memory_space<vmem>>, vector<1x128x128xbf16>
    %12 = vector.shape_cast %11 : vector<1x128x128xbf16> to vector<128x128xbf16>
    %cst_10 = arith.constant dense<0.000000e+00> : vector<8x128xf32>
    %13 = tpu.matmul %10, %12, %cst_10 {dimension_numbers = #tpu.dot_dimension_numbers<[1], [0], [0], [1], [0, 0, 1, 1], [], []>} : vector<8x128xbf16>, vector<128x128xbf16>, vector<8x128xf32> -> vector<8x128xf32>
    %c1_11 = arith.constant 1 : index
    %c0_12 = arith.constant 0 : index
    %c0_13 = arith.constant 0 : index
    %14 = vector.load %arg3[%c1_11, %c0_12, %c0_13] : memref<7x1x128xf32, #tpu.memory_space<vmem>>, vector<1x1x128xf32>
    %15 = vector.shape_cast %14 : vector<1x1x128xf32> to vector<1x128xf32>
    %16 = vector.broadcast %15 : vector<1x128xf32> to vector<8x128xf32>
    %17 = arith.addf %13, %16 : vector<8x128xf32>
    %cst_14 = arith.constant 0.000000e+00 : f32
    %18 = vector.broadcast %cst_14 : f32 to vector<8x128xf32>
    %19 = arith.maximumf %17, %18 : vector<8x128xf32>
    %20 = arith.truncf %19 : vector<8x128xf32> to vector<8x128xbf16>
    %c2 = arith.constant 2 : index
    %c0_15 = arith.constant 0 : index
    %c0_16 = arith.constant 0 : index
    %21 = vector.load %arg2[%c2, %c0_15, %c0_16] : memref<7x128x128xbf16, #tpu.memory_space<vmem>>, vector<1x128x128xbf16>
    %22 = vector.shape_cast %21 : vector<1x128x128xbf16> to vector<128x128xbf16>
    %cst_17 = arith.constant dense<0.000000e+00> : vector<8x128xf32>
    %23 = tpu.matmul %20, %22, %cst_17 {dimension_numbers = #tpu.dot_dimension_numbers<[1], [0], [0], [1], [0, 0, 1, 1], [], []>} : vector<8x128xbf16>, vector<128x128xbf16>, vector<8x128xf32> -> vector<8x128xf32>
    %c2_18 = arith.constant 2 : index
    %c0_19 = arith.constant 0 : index
    %c0_20 = arith.constant 0 : index
    %24 = vector.load %arg3[%c2_18, %c0_19, %c0_20] : memref<7x1x128xf32, #tpu.memory_space<vmem>>, vector<1x1x128xf32>
    %25 = vector.shape_cast %24 : vector<1x1x128xf32> to vector<1x128xf32>
    %26 = vector.broadcast %25 : vector<1x128xf32> to vector<8x128xf32>
    %27 = arith.addf %23, %26 : vector<8x128xf32>
    %cst_21 = arith.constant 0.000000e+00 : f32
    %28 = vector.broadcast %cst_21 : f32 to vector<8x128xf32>
    %29 = arith.maximumf %27, %28 : vector<8x128xf32>
    %30 = arith.truncf %29 : vector<8x128xf32> to vector<8x128xbf16>
    %c3 = arith.constant 3 : index
    %c0_22 = arith.constant 0 : index
    %c0_23 = arith.constant 0 : index
    %31 = vector.load %arg2[%c3, %c0_22, %c0_23] : memref<7x128x128xbf16, #tpu.memory_space<vmem>>, vector<1x128x128xbf16>
    %32 = vector.shape_cast %31 : vector<1x128x128xbf16> to vector<128x128xbf16>
    %cst_24 = arith.constant dense<0.000000e+00> : vector<8x128xf32>
    %33 = tpu.matmul %30, %32, %cst_24 {dimension_numbers = #tpu.dot_dimension_numbers<[1], [0], [0], [1], [0, 0, 1, 1], [], []>} : vector<8x128xbf16>, vector<128x128xbf16>, vector<8x128xf32> -> vector<8x128xf32>
    %c3_25 = arith.constant 3 : index
    %c0_26 = arith.constant 0 : index
    %c0_27 = arith.constant 0 : index
    %34 = vector.load %arg3[%c3_25, %c0_26, %c0_27] : memref<7x1x128xf32, #tpu.memory_space<vmem>>, vector<1x1x128xf32>
    %35 = vector.shape_cast %34 : vector<1x1x128xf32> to vector<1x128xf32>
    %36 = vector.broadcast %35 : vector<1x128xf32> to vector<8x128xf32>
    %37 = arith.addf %33, %36 : vector<8x128xf32>
    %cst_28 = arith.constant 0.000000e+00 : f32
    %38 = vector.broadcast %cst_28 : f32 to vector<8x128xf32>
    %39 = arith.maximumf %37, %38 : vector<8x128xf32>
    %40 = arith.truncf %39 : vector<8x128xf32> to vector<8x128xbf16>
    %c4 = arith.constant 4 : index
    %c0_29 = arith.constant 0 : index
    %c0_30 = arith.constant 0 : index
    %41 = vector.load %arg2[%c4, %c0_29, %c0_30] : memref<7x128x128xbf16, #tpu.memory_space<vmem>>, vector<1x128x128xbf16>
    %42 = vector.shape_cast %41 : vector<1x128x128xbf16> to vector<128x128xbf16>
    %cst_31 = arith.constant dense<0.000000e+00> : vector<8x128xf32>
    %43 = tpu.matmul %40, %42, %cst_31 {dimension_numbers = #tpu.dot_dimension_numbers<[1], [0], [0], [1], [0, 0, 1, 1], [], []>} : vector<8x128xbf16>, vector<128x128xbf16>, vector<8x128xf32> -> vector<8x128xf32>
    %c4_32 = arith.constant 4 : index
    %c0_33 = arith.constant 0 : index
    %c0_34 = arith.constant 0 : index
    %44 = vector.load %arg3[%c4_32, %c0_33, %c0_34] : memref<7x1x128xf32, #tpu.memory_space<vmem>>, vector<1x1x128xf32>
    %45 = vector.shape_cast %44 : vector<1x1x128xf32> to vector<1x128xf32>
    %46 = vector.broadcast %45 : vector<1x128xf32> to vector<8x128xf32>
    %47 = arith.addf %43, %46 : vector<8x128xf32>
    %cst_35 = arith.constant 0.000000e+00 : f32
    %48 = vector.broadcast %cst_35 : f32 to vector<8x128xf32>
    %49 = arith.maximumf %47, %48 : vector<8x128xf32>
    %50 = arith.truncf %49 : vector<8x128xf32> to vector<8x128xbf16>
    %c5 = arith.constant 5 : index
    %c0_36 = arith.constant 0 : index
    %c0_37 = arith.constant 0 : index
    %51 = vector.load %arg2[%c5, %c0_36, %c0_37] : memref<7x128x128xbf16, #tpu.memory_space<vmem>>, vector<1x128x128xbf16>
    %52 = vector.shape_cast %51 : vector<1x128x128xbf16> to vector<128x128xbf16>
    %cst_38 = arith.constant dense<0.000000e+00> : vector<8x128xf32>
    %53 = tpu.matmul %50, %52, %cst_38 {dimension_numbers = #tpu.dot_dimension_numbers<[1], [0], [0], [1], [0, 0, 1, 1], [], []>} : vector<8x128xbf16>, vector<128x128xbf16>, vector<8x128xf32> -> vector<8x128xf32>
    %c5_39 = arith.constant 5 : index
    %c0_40 = arith.constant 0 : index
    %c0_41 = arith.constant 0 : index
    %54 = vector.load %arg3[%c5_39, %c0_40, %c0_41] : memref<7x1x128xf32, #tpu.memory_space<vmem>>, vector<1x1x128xf32>
    %55 = vector.shape_cast %54 : vector<1x1x128xf32> to vector<1x128xf32>
    %56 = vector.broadcast %55 : vector<1x128xf32> to vector<8x128xf32>
    %57 = arith.addf %53, %56 : vector<8x128xf32>
    %cst_42 = arith.constant 0.000000e+00 : f32
    %58 = vector.broadcast %cst_42 : f32 to vector<8x128xf32>
    %59 = arith.maximumf %57, %58 : vector<8x128xf32>
    %60 = arith.truncf %59 : vector<8x128xf32> to vector<8x128xbf16>
    %c6 = arith.constant 6 : index
    %c0_43 = arith.constant 0 : index
    %c0_44 = arith.constant 0 : index
    %61 = vector.load %arg2[%c6, %c0_43, %c0_44] : memref<7x128x128xbf16, #tpu.memory_space<vmem>>, vector<1x128x128xbf16>
    %62 = vector.shape_cast %61 : vector<1x128x128xbf16> to vector<128x128xbf16>
    %cst_45 = arith.constant dense<0.000000e+00> : vector<8x128xf32>
    %63 = tpu.matmul %60, %62, %cst_45 {dimension_numbers = #tpu.dot_dimension_numbers<[1], [0], [0], [1], [0, 0, 1, 1], [], []>} : vector<8x128xbf16>, vector<128x128xbf16>, vector<8x128xf32> -> vector<8x128xf32>
    %c6_46 = arith.constant 6 : index
    %c0_47 = arith.constant 0 : index
    %c0_48 = arith.constant 0 : index
    %64 = vector.load %arg3[%c6_46, %c0_47, %c0_48] : memref<7x1x128xf32, #tpu.memory_space<vmem>>, vector<1x1x128xf32>
    %65 = vector.shape_cast %64 : vector<1x1x128xf32> to vector<1x128xf32>
    %66 = vector.broadcast %65 : vector<1x128xf32> to vector<8x128xf32>
    %67 = arith.addf %63, %66 : vector<8x128xf32>
    %c0_49 = arith.constant 0 : index
    %c0_50 = arith.constant 0 : index
    %68 = vector.load %arg4[%c0_49, %c0_50] : memref<8x128xf32, #tpu.memory_space<vmem>>, vector<8x128xf32>
    tpu.vector_store %arg4[%c0_49, %c0_50], %67 {strides = array<i32>} : memref<8x128xf32, #tpu.memory_space<vmem>>, vector<8x128xf32>,
    return
  }
  func.func @transform_0(%arg0: i32) -> (i32, i32) {
    %c0_i32 = arith.constant 0 : i32
    %c0_i32_0 = arith.constant 0 : i32
    return %arg0, %c0_i32 : i32, i32
  }
  func.func @transform_1(%arg0: i32) -> (i32, i32, i32) {
    %c0_i32 = arith.constant 0 : i32
    %c0_i32_0 = arith.constant 0 : i32
    %c0_i32_1 = arith.constant 0 : i32
    %c0_i32_2 = arith.constant 0 : i32
    return %c0_i32, %c0_i32_0, %c0_i32_1 : i32, i32, i32
  }
  func.func @transform_2(%arg0: i32) -> (i32, i32, i32) {
    %c0_i32 = arith.constant 0 : i32
    %c0_i32_0 = arith.constant 0 : i32
    %c0_i32_1 = arith.constant 0 : i32
    %c0_i32_2 = arith.constant 0 : i32
    return %c0_i32, %c0_i32_0, %c0_i32_1 : i32, i32, i32
  }
  func.func @transform_3(%arg0: i32) -> (i32, i32) {
    %c0_i32 = arith.constant 0 : i32
    %c0_i32_0 = arith.constant 0 : i32
    return %arg0, %c0_i32 : i32, i32
  }
}

</mosaic_0001>

<bundles_post_ra>
// kernel: tpu_custom_call.1
= control target key start
LH: loop header
LB: loop body
LE: loop exit
PB: predicated region body
PF: predicated region fallthrough
CT: control target
= control target key end

     0   :  { %8 = vsyncpa [#allocation3], 0  ;;  %s1429_s0 = inlined_call_operand.hbm [shape: bf16[8,128], index: 0, kind: input, shape index: {}]   ;;  %s1430_s1 = inlined_call_operand.hbm [shape: bf16[7,128,128], index: 1, kind: input, shape index: {}]   ;;  %s1431_s2 = inlined_call_operand.vmem [shape: f32[7,1,128], index: 2, kind: input, shape index: {}]   ;;  %s1432_s3 = inlined_call_operand.hbm [shape: f32[8,128], index: 3, kind: output, shape index: {}]  }
   0x1   :  { %9 = vsyncpa [#allocation6], 0 }
   0x2   :  { %10 = vsyncpa [#allocation4], 0  ;;  %s1268_s12 = smov [#allocation2]   ;;  %s1269_s14 = smov [#allocation5]  }
   0x3   :  { %s17_s13 = sshll.u32 %s1268_s12, 4  ;;  %s26_s15 = sshll.u32 %s1269_s14, 4  ;;  %s18_s13 = int_to_ptr.vmem [resolvable:$true] %s17_s13  ;;  %s1295_s15 = int_to_ptr.vmem [resolvable:$true] %s26_s15 }
   0x4   :  { %s1196_s18 = scalar_lea.hbm %s1429_s0, 64 }
   0x5   :  { %p1197_p0 = scmp.ne.s32.totalorder %s1429_s0, %s1196_s18  ;;  %p1200_p1 = scmp.lt.u32.totalorder %s1196_s18, %s1429_s0 }
   0x7   :  { %p1202_p2 = pnand %p1200_p1, %p1197_p0 }
   0x9   :  { %1205 = shalt.err (!%p1202_p2)
}
   0xa   :  { %s1206_s23 = scalar_lea.vmem %s18_s13, 64  ;;  %p1211_p4 = scmp.lt.s32.totalorder %s18_s13, %s18_s13 }
   0xb   :  { %p1207_p3 = scmp.ne.s32.totalorder %s18_s13, %s1206_s23  ;;  %p1212_p5 = scmp.lt.s32.totalorder %s1206_s23, %s1206_s23 }
   0xd   :  { %p1213_p6 = por %p1212_p5, %p1211_p4 }
   0xf   :  { %p1214_p7 = pnand %p1213_p6, %p1207_p3 }
  0x11   :  { %1217 = shalt.err (!%p1214_p7)
}
  0x12   :  { %20 = dma.hbm_to_vmem [thread:$0]  %s1429_s0, 64, %s18_s13, [#allocation3]  }
  0x13   :  { %s1218_s28 = scalar_lea.hbm %s1430_s1, 7168 }
  0x14   :  { %p1219_p8 = scmp.ne.s32.totalorder %s1430_s1, %s1218_s28  ;;  %p1222_p9 = scmp.lt.u32.totalorder %s1218_s28, %s1430_s1 }
  0x16   :  { %p1224_p10 = pnand %p1222_p9, %p1219_p8 }
  0x18   :  { %1227 = shalt.err (!%p1224_p10)
}
  0x19   :  { %s1228_s6 = scalar_lea.vmem %s1295_s15, 7168  ;;  %p1233_p12 = scmp.lt.s32.totalorder %s1295_s15, %s1295_s15 }
  0x1a   :  { %p1229_p11 = scmp.ne.s32.totalorder %s1295_s15, %s1228_s6  ;;  %p1234_p13 = scmp.lt.s32.totalorder %s1228_s6, %s1228_s6 }
  0x1c   :  { %p1235_p0 = por %p1234_p13, %p1233_p12 }
  0x1e   :  { %p1236_p1 = pnand %p1235_p0, %p1229_p11 }
  0x20   :  { %1239 = shalt.err (!%p1236_p1)
}
  0x21   :  { %s1270_s0 = smov 64   ;;  %s1271_s7 = smov 4  }
  0x22   :  { %32 = dma.hbm_to_vmem [thread:$0]  %s1430_s1, 7168, %s1295_s15, [#allocation6], %s1270_s0, %s1270_s0, %s1271_s7  }
  0x23   :  { %1262 = dma.done.wait [#allocation3], 64  }
  0x24   :  { %1263 = vsyncadd [#allocation3], 4294967232 }
  0x25   :  { %1264 = dma.done.wait [#allocation6], 7168  }
  0x26   :  { %1265 = vsyncadd [#allocation6], 4294960128  ;;  %v1272_v0 = vmov 0.0   ;;  %vm1273_vm0 = vmmov 0   ;;  %v1140_v1 = vld [vmem:[#allocation5] sm:$0xff]   ;;  %v1141_v2 = vld [vmem:[#allocation5 + $0x8] sm:$0xff]  }
  0x27   :  { %993 = vmatprep.subr.bf16.mxu0 %v1272_v0  ;;  %1009 = vmatprep.mubr.msk.bf16.mxu0 %vm1273_vm0, %v1272_v0  ;;  %v1142_v3 = vld [vmem:[#allocation5 + $0x10] sm:$0xff]   ;;  %v1148_v4 = vld [vmem:[#allocation5 + $0x40] sm:$0xff]   ;;  %v1143_v5 = vld [vmem:[#allocation5 + $0x18] sm:$0xff]   ;;  %s1274_s23 = smov [#allocation7]  }
  0x28   :  { %1013 = vmatprep.subr.bf16.mxu1 %v1272_v0  ;;  %1029 = vmatprep.mubr.msk.bf16.mxu1 %vm1273_vm0, %v1272_v0  ;;  %v1149_v6 = vld [vmem:[#allocation5 + $0x48] sm:$0xff]   ;;  %v1144_v7 = vld [vmem:[#allocation5 + $0x20] sm:$0xff]   ;;  %v1150_v8 = vld [vmem:[#allocation5 + $0x50] sm:$0xff]   ;;  %s851_s24 = sshll.u32 %s1274_s23, 4  ;;  %s852_s24 = int_to_ptr.vmem [resolvable:$true] %s851_s24 }
  0x29   :  { %994 = vmatpush3.bf16.msra.mxu0 %v1140_v1  ;;  %1014 = vmatpush3.bf16.msra.mxu1 %v1148_v4  ;;  %v1145_v9 = vld [vmem:[#allocation5 + $0x28] sm:$0xff]   ;;  %v1151_v10 = vld [vmem:[#allocation5 + $0x58] sm:$0xff]   ;;  %v1146_v11 = vld [vmem:[#allocation5 + $0x30] sm:$0xff]   ;;  %s1240_s25 = scalar_lea.vmem %s852_s24, 128  ;;  %p1245_p3 = scmp.lt.s32.totalorder %s852_s24, %s852_s24 }
  0x2a   :  { %995 = vmatprep.subr.bf16.mxu0 %v1272_v0  ;;  %1015 = vmatprep.subr.bf16.mxu1 %v1272_v0  ;;  %v1152_v12 = vld [vmem:[#allocation5 + $0x60] sm:$0xff]   ;;  %v1147_v13 = vld [vmem:[#allocation5 + $0x38] sm:$0xff]   ;;  %v1153_v14 = vld [vmem:[#allocation5 + $0x68] sm:$0xff]   ;;  %p1241_p2 = scmp.ne.s32.totalorder %s852_s24, %s1240_s25  ;;  %p1246_p4 = scmp.lt.s32.totalorder %s1240_s25, %s1240_s25 }
  0x2b   :  { %v42_v15 = vld [vmem:[#allocation2] sm:$0xf]  ;;  %v1154_v16 = vld [vmem:[#allocation5 + $0x70] sm:$0xff]   ;;  %v1156_v18 = vld [vmem:[#allocation5 + $0x80] sm:$0xff]  }
  0x2c   :  { %v1155_v17 = vld [vmem:[#allocation5 + $0x78] sm:$0xff]   ;;  %v1157_v19 = vld [vmem:[#allocation5 + $0x88] sm:$0xff]   ;;  %v1158_v20 = vld [vmem:[#allocation5 + $0x90] sm:$0xff]   ;;  %p1247_p5 = por %p1246_p4, %p1245_p3 }
  0x2d   :  { %996 = vmatpush3.bf16.msra.mxu0 %v1141_v2  ;;  %1016 = vmatpush3.bf16.msra.mxu1 %v1149_v6  ;;  %v1159_v21 = vld [vmem:[#allocation5 + $0x98] sm:$0xff]   ;;  %v1160_v22 = vld [vmem:[#allocation5 + $0xa0] sm:$0xff]   ;;  %v1161_v23 = vld [vmem:[#allocation5 + $0xa8] sm:$0xff]  }
  0x2e   :  { %997 = vmatprep.subr.bf16.mxu0 %v1272_v0  ;;  %1017 = vmatprep.subr.bf16.mxu1 %v1272_v0  ;;  %v861_v24 = vld [vmem:[%s1431_s2] ss:$0 sm:$0xff]  ;;  %v1163_v33 = vld [vmem:[#allocation5 + $0xb8] sm:$0xff]   ;;  %v1164_v34 = vld [vmem:[#allocation5 + $0xc0] sm:$0xff]   ;;  %p1248_p6 = pnand %p1247_p5, %p1241_p2 }
  0x2f   :  { %v1162_v32 = vld [vmem:[#allocation5 + $0xb0] sm:$0xff]   ;;  %v1165_v35 = vld [vmem:[#allocation5 + $0xc8] sm:$0xff]   ;;  %v1167_v37 = vld [vmem:[#allocation5 + $0xd8] sm:$0xff]  }
  0x30   :  { %v1166_v36 = vld [vmem:[#allocation5 + $0xd0] sm:$0xff]   ;;  %v1168_v38 = vld [vmem:[#allocation5 + $0xe0] sm:$0xff]   ;;  %v1169_v39 = vld [vmem:[#allocation5 + $0xe8] sm:$0xff]  }
  0x31   :  { %998 = vmatpush3.bf16.msra.mxu0 %v1142_v3  ;;  %1018 = vmatpush3.bf16.msra.mxu1 %v1150_v8  ;;  %v871_v40 = vld [vmem:[%s1431_s2 + $0x1] ss:$0 sm:$0xff]  ;;  %v1171_v49 = vld [vmem:[#allocation5 + $0xf8] sm:$0xff]   ;;  %v1172_v50 = vld [vmem:[#allocation5 + $0x100] sm:$0xff]  }
  0x32   :  { %999 = vmatprep.subr.bf16.mxu0 %v1272_v0  ;;  %1019 = vmatprep.subr.bf16.mxu1 %v1272_v0  ;;  %v1170_v48 = vld [vmem:[#allocation5 + $0xf0] sm:$0xff]   ;;  %v1173_v51 = vld [vmem:[#allocation5 + $0x108] sm:$0xff]   ;;  %v1175_v53 = vld [vmem:[#allocation5 + $0x118] sm:$0xff]  }
  0x33   :  { %v1174_v52 = vld [vmem:[#allocation5 + $0x110] sm:$0xff]   ;;  %v1176_v54 = vld [vmem:[#allocation5 + $0x120] sm:$0xff]   ;;  %v1177_v55 = vld [vmem:[#allocation5 + $0x128] sm:$0xff]  }
  0x34   :  { %v881_v56 = vld [vmem:[%s1431_s2 + $0x2] ss:$0 sm:$0xff]  ;;  %v1179_v2 = vld [vmem:[#allocation5 + $0x138] sm:$0xff]   ;;  %v1180_v3 = vld [vmem:[#allocation5 + $0x140] sm:$0xff]  }
  0x35   :  { %1000 = vmatpush3.bf16.msra.mxu0 %v1143_v5  ;;  %1020 = vmatpush3.bf16.msra.mxu1 %v1151_v10  ;;  %v1178_v1 = vld [vmem:[#allocation5 + $0x130] sm:$0xff]   ;;  %v1181_v4 = vld [vmem:[#allocation5 + $0x148] sm:$0xff]   ;;  %v1183_v6 = vld [vmem:[#allocation5 + $0x158] sm:$0xff]  }
  0x36   :  { %1001 = vmatprep.subr.bf16.mxu0 %v1272_v0  ;;  %1021 = vmatprep.subr.bf16.mxu1 %v1272_v0  ;;  %v1182_v5 = vld [vmem:[#allocation5 + $0x150] sm:$0xff]   ;;  %v1185_v8 = vld [vmem:[#allocation5 + $0x168] sm:$0xff]  }
  0x39   :  { %1002 = vmatpush3.bf16.msra.mxu0 %v1144_v7  ;;  %1022 = vmatpush3.bf16.msra.mxu1 %v1152_v12  ;;  %v1184_v7 = vld [vmem:[#allocation5 + $0x160] sm:$0xff]  }
  0x3a   :  { %1003 = vmatprep.subr.bf16.mxu0 %v1272_v0  ;;  %1023 = vmatprep.subr.bf16.mxu1 %v1272_v0 }
  0x3d   :  { %1004 = vmatpush3.bf16.msra.mxu0 %v1145_v9  ;;  %1024 = vmatpush3.bf16.msra.mxu1 %v1153_v14  ;;  %v891_v9 = vld [vmem:[%s1431_s2 + $0x3] ss:$0 sm:$0xff] }
  0x3e   :  { %1005 = vmatprep.subr.bf16.mxu0 %v1272_v0  ;;  %1025 = vmatprep.subr.bf16.mxu1 %v1272_v0 }
  0x41   :  { %1006 = vmatpush3.bf16.msra.mxu0 %v1146_v11  ;;  %1026 = vmatpush3.bf16.msra.mxu1 %v1154_v16 }
  0x42   :  { %1007 = vmatprep.subr.bf16.mxu0 %v1272_v0  ;;  %1027 = vmatprep.subr.bf16.mxu1 %v1272_v0 }
  0x45   :  { %1008 = vmatpush3.bf16.msra.mxu0 %v1147_v13  ;;  %1028 = vmatpush3.bf16.msra.mxu1 %v1155_v17  ;;  %v1186_v17 = vld [vmem:[#allocation5 + $0x170] sm:$0xff]  }
  0x46   :  { %1033 = vmatprep.subr.bf16.mxu0 %v1272_v0  ;;  %1053 = vmatprep.subr.bf16.mxu1 %v1272_v0 }
  0x48   :  { %1010 = vmatmul.mubr.bf16.vlgmr.msra.gmra.mrb[0].mxu0 %v42_v15 }
  0x49   :  { %1049 = vmatprep.mubr.msk.bf16.mxu0 %vm1273_vm0, %v1272_v0  ;;  %1034 = vmatpush3.bf16.msra.mxu0 %v1156_v18  ;;  %v1187_v18 = vld [vmem:[#allocation5 + $0x178] sm:$0xff]  }
  0x4a   :  { %1035 = vmatprep.subr.bf16.mxu0 %v1272_v0 }
  0x4d   :  { %1036 = vmatpush3.bf16.msra.mxu0 %v1157_v19  ;;  %v1188_v19 = vld [vmem:[#allocation5 + $0x180] sm:$0xff]  }
  0x4e   :  { %1037 = vmatprep.subr.bf16.mxu0 %v1272_v0 }
  0x51   :  { %1038 = vmatpush3.bf16.msra.mxu0 %v1158_v20  ;;  %v1189_v20 = vld [vmem:[#allocation5 + $0x188] sm:$0xff]  }
  0x52   :  { %1039 = vmatprep.subr.bf16.mxu0 %v1272_v0 }
  0x55   :  { %1040 = vmatpush3.bf16.msra.mxu0 %v1159_v21  ;;  %v1190_v21 = vld [vmem:[#allocation5 + $0x190] sm:$0xff]  }
  0x56   :  { %1041 = vmatprep.subr.bf16.mxu0 %v1272_v0 }
  0x59   :  { %1042 = vmatpush3.bf16.msra.mxu0 %v1160_v22  ;;  %v1191_v22 = vld [vmem:[#allocation5 + $0x198] sm:$0xff]  }
  0x5a   :  { %1043 = vmatprep.subr.bf16.mxu0 %v1272_v0 }
  0x5d   :  { %1044 = vmatpush3.bf16.msra.mxu0 %v1161_v23  ;;  %v1192_v23 = vld [vmem:[#allocation5 + $0x1a0] sm:$0xff]  }
  0x5e   :  { %1045 = vmatprep.subr.bf16.mxu0 %v1272_v0 }
  0x61   :  { %1046 = vmatpush3.bf16.msra.mxu0 %v1162_v32 }
  0x62   :  { %1047 = vmatprep.subr.bf16.mxu0 %v1272_v0 }
  0x65   :  { %1048 = vmatpush3.bf16.msra.mxu0 %v1163_v33  ;;  %v1194_v33 = vld [vmem:[#allocation5 + $0x1b0] sm:$0xff]  }
  0x66   :  { %1073 = vmatprep.subr.bf16.mxu0 %v1272_v0 }
 0x11b   :  { %v148_v25 = vpop.f32.mrb[0].mxu0 }
 0x11c   :  { %v149_v26 = vadd.f32 %v861_v24, %v148_v25  ;;  %v1011_v27 = vpop.f32.mrb[1].mxu0  ;;  %v1193_v24 = vld [vmem:[#allocation5 + $0x1a8] sm:$0xff]   ;;  %v901_v25 = vld [vmem:[%s1431_s2 + $0x4] ss:$0 sm:$0xff] }
 0x11d   :  { %v151_v28 = vpop.f32.mrb[2].mxu0 }
 0x11e   :  { %v154_v29 = vmax.f32 %v149_v26, 0.0  ;;  %v1012_v30 = vpop.f32.mrb[3].mxu0 }
 0x120   :  { %v155_v31 = vpack.c.bf16 %v154_v29, %v154_v29 }
 0x122   :  { %1030 = vmatmul.mubr.bf16.vlgmr.msra.gmra.mrb[0].mxu1 %v155_v31 }
 0x123   :  { %1069 = vmatprep.mubr.msk.bf16.mxu1 %vm1273_vm0, %v1272_v0  ;;  %1054 = vmatpush3.bf16.msra.mxu1 %v1164_v34  ;;  %v1195_v34 = vld [vmem:[#allocation5 + $0x1b8] sm:$0xff]  }
 0x124   :  { %1055 = vmatprep.subr.bf16.mxu1 %v1272_v0 }
 0x127   :  { %1056 = vmatpush3.bf16.msra.mxu1 %v1165_v35  ;;  %v911_v35 = vld [vmem:[%s1431_s2 + $0x5] ss:$0 sm:$0xff] }
 0x128   :  { %1057 = vmatprep.subr.bf16.mxu1 %v1272_v0 }
 0x12b   :  { %1058 = vmatpush3.bf16.msra.mxu1 %v1166_v36 }
 0x12c   :  { %1059 = vmatprep.subr.bf16.mxu1 %v1272_v0 }
 0x12f   :  { %1060 = vmatpush3.bf16.msra.mxu1 %v1167_v37 }
 0x130   :  { %1061 = vmatprep.subr.bf16.mxu1 %v1272_v0 }
 0x133   :  { %1062 = vmatpush3.bf16.msra.mxu1 %v1168_v38 }
 0x134   :  { %1063 = vmatprep.subr.bf16.mxu1 %v1272_v0 }
 0x137   :  { %1064 = vmatpush3.bf16.msra.mxu1 %v1169_v39 }
 0x138   :  { %1065 = vmatprep.subr.bf16.mxu1 %v1272_v0 }
 0x13b   :  { %1066 = vmatpush3.bf16.msra.mxu1 %v1170_v48 }
 0x13c   :  { %1067 = vmatprep.subr.bf16.mxu1 %v1272_v0 }
 0x13f   :  { %1068 = vmatpush3.bf16.msra.mxu1 %v1171_v49 }
 0x140   :  { %1093 = vmatprep.subr.bf16.mxu1 %v1272_v0 }
 0x1f5   :  { %v263_v41 = vpop.f32.mrb[0].mxu1 }
 0x1f6   :  { %v264_v42 = vadd.f32 %v871_v40, %v263_v41  ;;  %v1031_v43 = vpop.f32.mrb[1].mxu1 }
 0x1f7   :  { %v266_v44 = vpop.f32.mrb[2].mxu1  ;;  %v921_v43 = vld [vmem:[%s1431_s2 + $0x6] ss:$0 sm:$0xff] }
 0x1f8   :  { %v269_v45 = vmax.f32 %v264_v42, 0.0  ;;  %v1032_v46 = vpop.f32.mrb[3].mxu1 }
 0x1fa   :  { %v270_v47 = vpack.c.bf16 %v269_v45, %v269_v45 }
 0x1fc   :  { %1050 = vmatmul.mubr.bf16.vlgmr.msra.gmra.mrb[4].mxu0 %v270_v47 }
 0x1fd   :  { %1089 = vmatprep.mubr.msk.bf16.mxu0 %vm1273_vm0, %v1272_v0  ;;  %1074 = vmatpush3.bf16.msra.mxu0 %v1172_v50 }
 0x1fe   :  { %1075 = vmatprep.subr.bf16.mxu0 %v1272_v0 }
 0x201   :  { %1076 = vmatpush3.bf16.msra.mxu0 %v1173_v51 }
 0x202   :  { %1077 = vmatprep.subr.bf16.mxu0 %v1272_v0 }
 0x205   :  { %1078 = vmatpush3.bf16.msra.mxu0 %v1174_v52 }
 0x206   :  { %1079 = vmatprep.subr.bf16.mxu0 %v1272_v0 }
 0x209   :  { %1080 = vmatpush3.bf16.msra.mxu0 %v1175_v53 }
 0x20a   :  { %1081 = vmatprep.subr.bf16.mxu0 %v1272_v0 }
 0x20d   :  { %1082 = vmatpush3.bf16.msra.mxu0 %v1176_v54 }
 0x20e   :  { %1083 = vmatprep.subr.bf16.mxu0 %v1272_v0 }
 0x211   :  { %1084 = vmatpush3.bf16.msra.mxu0 %v1177_v55 }
 0x212   :  { %1085 = vmatprep.subr.bf16.mxu0 %v1272_v0 }
 0x215   :  { %1086 = vmatpush3.bf16.msra.mxu0 %v1178_v1 }
 0x216   :  { %1087 = vmatprep.subr.bf16.mxu0 %v1272_v0 }
 0x219   :  { %1088 = vmatpush3.bf16.msra.mxu0 %v1179_v2 }
 0x21a   :  { %1113 = vmatprep.subr.bf16.mxu0 %v1272_v0 }
 0x2cf   :  { %v378_v57 = vpop.f32.mrb[4].mxu0 }
 0x2d0   :  { %v379_v58 = vadd.f32 %v881_v56, %v378_v57  ;;  %v1051_v59 = vpop.f32.mrb[5].mxu0 }
 0x2d1   :  { %v381_v60 = vpop.f32.mrb[6].mxu0 }
 0x2d2   :  { %v384_v61 = vmax.f32 %v379_v58, 0.0  ;;  %v1052_v62 = vpop.f32.mrb[7].mxu0 }
 0x2d4   :  { %v385_v63 = vpack.c.bf16 %v384_v61, %v384_v61 }
 0x2d6   :  { %1070 = vmatmul.mubr.bf16.vlgmr.msra.gmra.mrb[4].mxu1 %v385_v63 }
 0x2d7   :  { %1109 = vmatprep.mubr.msk.bf16.mxu1 %vm1273_vm0, %v1272_v0  ;;  %1094 = vmatpush3.bf16.msra.mxu1 %v1180_v3 }
 0x2d8   :  { %1095 = vmatprep.subr.bf16.mxu1 %v1272_v0 }
 0x2db   :  { %1096 = vmatpush3.bf16.msra.mxu1 %v1181_v4 }
 0x2dc   :  { %1097 = vmatprep.subr.bf16.mxu1 %v1272_v0 }
 0x2df   :  { %1098 = vmatpush3.bf16.msra.mxu1 %v1182_v5 }
 0x2e0   :  { %1099 = vmatprep.subr.bf16.mxu1 %v1272_v0 }
 0x2e3   :  { %1100 = vmatpush3.bf16.msra.mxu1 %v1183_v6 }
 0x2e4   :  { %1101 = vmatprep.subr.bf16.mxu1 %v1272_v0 }
 0x2e7   :  { %1102 = vmatpush3.bf16.msra.mxu1 %v1184_v7 }
 0x2e8   :  { %1103 = vmatprep.subr.bf16.mxu1 %v1272_v0 }
 0x2eb   :  { %1104 = vmatpush3.bf16.msra.mxu1 %v1185_v8 }
 0x2ec   :  { %1105 = vmatprep.subr.bf16.mxu1 %v1272_v0 }
 0x2ef   :  { %1106 = vmatpush3.bf16.msra.mxu1 %v1186_v17 }
 0x2f0   :  { %1107 = vmatprep.subr.bf16.mxu1 %v1272_v0 }
 0x2f3   :  { %1108 = vmatpush3.bf16.msra.mxu1 %v1187_v18 }
 0x3a9   :  { %v493_v10 = vpop.f32.mrb[4].mxu1 }
 0x3aa   :  { %v494_v11 = vadd.f32 %v891_v9, %v493_v10  ;;  %v1071_v12 = vpop.f32.mrb[5].mxu1 }
 0x3ab   :  { %v496_v13 = vpop.f32.mrb[6].mxu1 }
 0x3ac   :  { %v499_v14 = vmax.f32 %v494_v11, 0.0  ;;  %v1072_v15 = vpop.f32.mrb[7].mxu1 }
 0x3ae   :  { %v500_v16 = vpack.c.bf16 %v499_v14, %v499_v14 }
 0x3b0   :  { %1090 = vmatmul.mubr.bf16.vlgmr.msra.gmra.mrb[8].mxu0 %v500_v16 }
 0x3b1   :  { %1129 = vmatprep.mubr.msk.bf16.mxu0 %vm1273_vm0, %v1272_v0  ;;  %1114 = vmatpush3.bf16.msra.mxu0 %v1188_v19 }
 0x3b2   :  { %1115 = vmatprep.subr.bf16.mxu0 %v1272_v0 }
 0x3b5   :  { %1116 = vmatpush3.bf16.msra.mxu0 %v1189_v20 }
 0x3b6   :  { %1117 = vmatprep.subr.bf16.mxu0 %v1272_v0 }
 0x3b9   :  { %1118 = vmatpush3.bf16.msra.mxu0 %v1190_v21 }
 0x3ba   :  { %1119 = vmatprep.subr.bf16.mxu0 %v1272_v0 }
 0x3bd   :  { %1120 = vmatpush3.bf16.msra.mxu0 %v1191_v22 }
 0x3be   :  { %1121 = vmatprep.subr.bf16.mxu0 %v1272_v0 }
 0x3c1   :  { %1122 = vmatpush3.bf16.msra.mxu0 %v1192_v23 }
 0x3c2   :  { %1123 = vmatprep.subr.bf16.mxu0 %v1272_v0 }
 0x3c5   :  { %1124 = vmatpush3.bf16.msra.mxu0 %v1193_v24 }
 0x3c6   :  { %1125 = vmatprep.subr.bf16.mxu0 %v1272_v0 }
 0x3c9   :  { %1126 = vmatpush3.bf16.msra.mxu0 %v1194_v33 }
 0x3ca   :  { %1127 = vmatprep.subr.bf16.mxu0 %v1272_v0 }
 0x3cd   :  { %1128 = vmatpush3.bf16.msra.mxu0 %v1195_v34 }
 0x483   :  { %v608_v26 = vpop.f32.mrb[8].mxu0 }
 0x484   :  { %v609_v27 = vadd.f32 %v901_v25, %v608_v26  ;;  %v1091_v28 = vpop.f32.mrb[9].mxu0 }
 0x485   :  { %v611_v29 = vpop.f32.mrb[10].mxu0 }
 0x486   :  { %v614_v30 = vmax.f32 %v609_v27, 0.0  ;;  %v1092_v31 = vpop.f32.mrb[11].mxu0 }
 0x488   :  { %v615_v32 = vpack.c.bf16 %v614_v30, %v614_v30 }
 0x48a   :  { %1110 = vmatmul.mubr.bf16.vlgmr.msra.gmra.mrb[8].mxu1 %v615_v32 }
 0x55d   :  { %v723_v36 = vpop.f32.mrb[8].mxu1 }
 0x55e   :  { %v724_v37 = vadd.f32 %v911_v35, %v723_v36  ;;  %v1111_v38 = vpop.f32.mrb[9].mxu1 }
 0x55f   :  { %v726_v39 = vpop.f32.mrb[10].mxu1 }
 0x560   :  { %v729_v40 = vmax.f32 %v724_v37, 0.0  ;;  %v1112_v41 = vpop.f32.mrb[11].mxu1 }
 0x562   :  { %v730_v42 = vpack.c.bf16 %v729_v40, %v729_v40 }
 0x564   :  { %1130 = vmatmul.mubr.bf16.vlgmr.msra.gmra.mrb[12].mxu0 %v730_v42 }
 0x637   :  { %v838_v0 = vpop.f32.mrb[12].mxu0 }
 0x638   :  { %v839_v44 = vadd.f32 %v921_v43, %v838_v0  ;;  %v1131_v45 = vpop.f32.mrb[13].mxu0 }
 0x639   :  { %v841_v46 = vpop.f32.mrb[14].mxu0 }
 0x63a   :  { %844 = vst [vmem:[#allocation7] sm:$0xff] %v839_v44  ;;  %v1132_v47 = vpop.f32.mrb[15].mxu0 }
 0x63b   :  { %1251 = shalt.err (!%p1248_p6)
}
 0x63c   :  { %s1252_s2 = scalar_lea.hbm %s1432_s3, 128 }
 0x63d   :  { %p1253_p7 = scmp.ne.s32.totalorder %s1432_s3, %s1252_s2  ;;  %p1256_p8 = scmp.lt.u32.totalorder %s1252_s2, %s1432_s3 }
 0x63f   :  { %p1258_p9 = pnand %p1256_p8, %p1253_p7 }
 0x641   :  { %1261 = shalt.err (!%p1258_p9)
}
 0x642   :  { %854 = dma.vmem_to_hbm [thread:$0]  %s852_s24, 128, %s1432_s3, [#allocation4]  }
 0x643   :  { %1266 = dma.done.wait [#allocation4], 128  }
 0x644   :  { %1267 = vsyncadd [#allocation4], 4294967168 }
 0x645   :  { %858 = vsyncpa [#allocation3], 1 }
 0x646   :  { %859 = vsyncpa [#allocation6], 1 }
 0x647   :  { %860 = vsyncpa [#allocation4], 1 }

</bundles_post_ra>
